<compile_context>
chip_gen: v6e
topology: v6e:2x2x1
jax: 0.10.0
libtpu: 0.0.40
codegen_flags: <defaults>
</compile_context>

<pallas_src>
import jax
import jax.numpy as jnp
from jax.experimental import pallas as pl
from jax.experimental.pallas import tpu as pltpu

LANE = 128  # pad all feature dims to one full lane width


def mlp9_kernel(latent_ref, w_ref, b_ref, out_ref):
    # latent_ref: (8, 128)      row 0: latent at lanes [0:in_ch], rest 0
    #                           row 1: latent at lanes [hidden-in_ch:hidden], rest 0
    # w_ref:      (9, 128, 128) weight i as (in, out), zero-padded to 128x128
    # b_ref:      (9, 1, 128)   bias i, zero-padded to 128 lanes
    # out_ref:    (1, 128)      lanes [0:out_ch] valid, rest 0
    x = latent_ref[0:1, :]        # (1, 128) net1 input
    x_shift = latent_ref[1:2, :]  # (1, 128) latent pre-shifted for the "concat"

    def layer(h, i, relu=True):
        # Zero-padded lanes stay exactly zero through every layer:
        # padded weight rows/cols and padded bias lanes are 0, and ReLU(0) = 0.
        y = jnp.dot(h, w_ref[i], preferred_element_type=jnp.float32) + b_ref[i]
        return jnp.maximum(y, 0.0) if relu else y

    # ---- net1 ----
    h = layer(x, 0)
    h = layer(h, 1)
    h = layer(h, 2)
    out1 = layer(h, 3)            # lanes [0:hidden-in_ch] valid, rest exactly 0

    # ---- concat([out1, latent], dim=-1)  ==  out1 + latent shifted to the tail lanes ----
    in2 = out1 + x_shift

    # ---- net2 ----
    h = layer(in2, 4)
    h = layer(h, 5)
    h = layer(h, 6)
    h = layer(h, 7)
    out_ref[...] = layer(h, 8, relu=False)


def init_params(key, in_ch, out_ch, hidden_ch):
    """Deterministic parameter init mirroring nn.Linear / torch.rand shapes.

    Weights are returned as (in_features, out_features)."""
    dims = [
        (in_ch, hidden_ch),                 # net1.0
        (hidden_ch, hidden_ch),             # net1.2
        (hidden_ch, hidden_ch),             # net1.4
        (hidden_ch, hidden_ch - in_ch),     # net1.6
        (hidden_ch, hidden_ch),             # net2.0
        (hidden_ch, hidden_ch),             # net2.2
        (hidden_ch, hidden_ch),             # net2.4
        (hidden_ch, hidden_ch),             # net2.6
        (hidden_ch, out_ch),                # net2.8
    ]
    keys = jax.random.split(key, 1 + 2 * len(dims))
    latent = jax.random.uniform(keys[0], (1, in_ch), dtype=jnp.float32)  # torch.rand
    params = []
    for i, (fan_in, fan_out) in enumerate(dims):
        bound = 1.0 / jnp.sqrt(jnp.float32(fan_in))
        w = jax.random.uniform(keys[1 + 2 * i], (fan_in, fan_out),
                               minval=-bound, maxval=bound, dtype=jnp.float32)
        b = jax.random.uniform(keys[2 + 2 * i], (fan_out,),
                               minval=-bound, maxval=bound, dtype=jnp.float32)
        params.append((w, b))
    return latent, params


def pack_params(latent, params, in_ch, hidden_ch):
    """Pack latent / weights / biases into 3 lane-dense VMEM-friendly slabs."""
    n = len(params)
    w_slab = jnp.zeros((n, LANE, LANE), jnp.float32)
    b_slab = jnp.zeros((n, 1, LANE), jnp.float32)
    for i, (w, b) in enumerate(params):
        fan_in, fan_out = w.shape
        w_slab = w_slab.at[i, :fan_in, :fan_out].set(w)
        b_slab = b_slab.at[i, 0, :fan_out].set(b)
    latent_flat = latent.reshape(-1)
    latent_pack = jnp.zeros((8, LANE), jnp.float32)
    latent_pack = latent_pack.at[0, :in_ch].set(latent_flat)
    latent_pack = latent_pack.at[1, hidden_ch - in_ch:hidden_ch].set(latent_flat)
    return latent_pack, w_slab, b_slab


def mlp9_forward(latent_pack, w_slab, b_slab, out_ch):
    vmem = pl.BlockSpec(memory_space=pltpu.MemorySpace.VMEM)
    out_padded = pl.pallas_call(
        mlp9_kernel,
        out_shape=jax.ShapeDtypeStruct((1, LANE), jnp.float32),
        in_specs=[vmem, vmem, vmem],
        out_specs=vmem,
    )(latent_pack, w_slab, b_slab)
    return out_padded[:, :out_ch]


def mlp9_ref(latent, params):
    """Pure-JAX reference (unpadded) for correctness checking."""
    x = latent
    h = x
    for w, b in params[:4]:
        h = jnp.maximum(h @ w + b[None, :], 0.0)
    h = jnp.concatenate([h, x], axis=-1)
    for w, b in params[4:8]:
        h = jnp.maximum(h @ w + b[None, :], 0.0)
    w, b = params[8]
    return h @ w + b[None, :]


if __name__ == "__main__":
    in_ch, out_ch, hidden_ch = 4, 4, 32

    key = jax.random.PRNGKey(0)
    latent, params = init_params(key, in_ch, out_ch, hidden_ch)
    latent_pack, w_slab, b_slab = pack_params(latent, params, in_ch, hidden_ch)

    out = mlp9_forward(latent_pack, w_slab, b_slab, out_ch)
    out = jax.block_until_ready(out)

    ref = mlp9_ref(latent, params)
    assert out.shape == (1, out_ch)
    assert jnp.allclose(out, ref, atol=1e-5, rtol=1e-5), (out, ref)

    print("KERNEL_OK")
</pallas_src>

<mosaic_0001>
module attributes {stable_mosaic.version = 11 : i64} {
  func.func @mlp9_kernel(%arg0: memref<8x128xf32, #tpu.memory_space<vmem>>, %arg1: memref<9x128x128xf32, #tpu.memory_space<vmem>>, %arg2: memref<9x1x128xf32, #tpu.memory_space<vmem>>, %arg3: memref<1x128xf32, #tpu.memory_space<vmem>>) attributes {dimension_semantics = [], scalar_prefetch = 0 : i64, scratch_operands = 0 : i64, tpu.core_type = #tpu.core_type<tc>} {
    %c0 = arith.constant 0 : index
    %c0_0 = arith.constant 0 : index
    %0 = vector.load %arg0[%c0, %c0_0] : memref<8x128xf32, #tpu.memory_space<vmem>>, vector<1x128xf32>
    %c1 = arith.constant 1 : index
    %c0_1 = arith.constant 0 : index
    %1 = vector.load %arg0[%c1, %c0_1] : memref<8x128xf32, #tpu.memory_space<vmem>>, vector<1x128xf32>
    %c0_2 = arith.constant 0 : index
    %c0_3 = arith.constant 0 : index
    %c0_4 = arith.constant 0 : index
    %2 = vector.load %arg1[%c0_2, %c0_3, %c0_4] : memref<9x128x128xf32, #tpu.memory_space<vmem>>, vector<1x128x128xf32>
    %3 = vector.shape_cast %2 : vector<1x128x128xf32> to vector<128x128xf32>
    %cst = arith.constant dense<0.000000e+00> : vector<1x128xf32>
    %4 = tpu.matmul %0, %3, %cst {dimension_numbers = #tpu.dot_dimension_numbers<[1], [0], [0], [1], [0, 0, 1, 1], [], []>} : vector<1x128xf32>, vector<128x128xf32>, vector<1x128xf32> -> vector<1x128xf32>
    %c0_5 = arith.constant 0 : index
    %c0_6 = arith.constant 0 : index
    %c0_7 = arith.constant 0 : index
    %5 = vector.load %arg2[%c0_5, %c0_6, %c0_7] : memref<9x1x128xf32, #tpu.memory_space<vmem>>, vector<1x1x128xf32>
    %6 = vector.shape_cast %5 : vector<1x1x128xf32> to vector<1x128xf32>
    %7 = arith.addf %4, %6 : vector<1x128xf32>
    %cst_8 = arith.constant 0.000000e+00 : f32
    %8 = vector.broadcast %cst_8 : f32 to vector<1x128xf32>
    %9 = arith.maximumf %7, %8 : vector<1x128xf32>
    %c1_9 = arith.constant 1 : index
    %c0_10 = arith.constant 0 : index
    %c0_11 = arith.constant 0 : index
    %10 = vector.load %arg1[%c1_9, %c0_10, %c0_11] : memref<9x128x128xf32, #tpu.memory_space<vmem>>, vector<1x128x128xf32>
    %11 = vector.shape_cast %10 : vector<1x128x128xf32> to vector<128x128xf32>
    %cst_12 = arith.constant dense<0.000000e+00> : vector<1x128xf32>
    %12 = tpu.matmul %9, %11, %cst_12 {dimension_numbers = #tpu.dot_dimension_numbers<[1], [0], [0], [1], [0, 0, 1, 1], [], []>} : vector<1x128xf32>, vector<128x128xf32>, vector<1x128xf32> -> vector<1x128xf32>
    %c1_13 = arith.constant 1 : index
    %c0_14 = arith.constant 0 : index
    %c0_15 = arith.constant 0 : index
    %13 = vector.load %arg2[%c1_13, %c0_14, %c0_15] : memref<9x1x128xf32, #tpu.memory_space<vmem>>, vector<1x1x128xf32>
    %14 = vector.shape_cast %13 : vector<1x1x128xf32> to vector<1x128xf32>
    %15 = arith.addf %12, %14 : vector<1x128xf32>
    %cst_16 = arith.constant 0.000000e+00 : f32
    %16 = vector.broadcast %cst_16 : f32 to vector<1x128xf32>
    %17 = arith.maximumf %15, %16 : vector<1x128xf32>
    %c2 = arith.constant 2 : index
    %c0_17 = arith.constant 0 : index
    %c0_18 = arith.constant 0 : index
    %18 = vector.load %arg1[%c2, %c0_17, %c0_18] : memref<9x128x128xf32, #tpu.memory_space<vmem>>, vector<1x128x128xf32>
    %19 = vector.shape_cast %18 : vector<1x128x128xf32> to vector<128x128xf32>
    %cst_19 = arith.constant dense<0.000000e+00> : vector<1x128xf32>
    %20 = tpu.matmul %17, %19, %cst_19 {dimension_numbers = #tpu.dot_dimension_numbers<[1], [0], [0], [1], [0, 0, 1, 1], [], []>} : vector<1x128xf32>, vector<128x128xf32>, vector<1x128xf32> -> vector<1x128xf32>
    %c2_20 = arith.constant 2 : index
    %c0_21 = arith.constant 0 : index
    %c0_22 = arith.constant 0 : index
    %21 = vector.load %arg2[%c2_20, %c0_21, %c0_22] : memref<9x1x128xf32, #tpu.memory_space<vmem>>, vector<1x1x128xf32>
    %22 = vector.shape_cast %21 : vector<1x1x128xf32> to vector<1x128xf32>
    %23 = arith.addf %20, %22 : vector<1x128xf32>
    %cst_23 = arith.constant 0.000000e+00 : f32
    %24 = vector.broadcast %cst_23 : f32 to vector<1x128xf32>
    %25 = arith.maximumf %23, %24 : vector<1x128xf32>
    %c3 = arith.constant 3 : index
    %c0_24 = arith.constant 0 : index
    %c0_25 = arith.constant 0 : index
    %26 = vector.load %arg1[%c3, %c0_24, %c0_25] : memref<9x128x128xf32, #tpu.memory_space<vmem>>, vector<1x128x128xf32>
    %27 = vector.shape_cast %26 : vector<1x128x128xf32> to vector<128x128xf32>
    %cst_26 = arith.constant dense<0.000000e+00> : vector<1x128xf32>
    %28 = tpu.matmul %25, %27, %cst_26 {dimension_numbers = #tpu.dot_dimension_numbers<[1], [0], [0], [1], [0, 0, 1, 1], [], []>} : vector<1x128xf32>, vector<128x128xf32>, vector<1x128xf32> -> vector<1x128xf32>
    %c3_27 = arith.constant 3 : index
    %c0_28 = arith.constant 0 : index
    %c0_29 = arith.constant 0 : index
    %29 = vector.load %arg2[%c3_27, %c0_28, %c0_29] : memref<9x1x128xf32, #tpu.memory_space<vmem>>, vector<1x1x128xf32>
    %30 = vector.shape_cast %29 : vector<1x1x128xf32> to vector<1x128xf32>
    %31 = arith.addf %28, %30 : vector<1x128xf32>
    %cst_30 = arith.constant 0.000000e+00 : f32
    %32 = vector.broadcast %cst_30 : f32 to vector<1x128xf32>
    %33 = arith.maximumf %31, %32 : vector<1x128xf32>
    %34 = arith.addf %33, %1 : vector<1x128xf32>
    %c4 = arith.constant 4 : index
    %c0_31 = arith.constant 0 : index
    %c0_32 = arith.constant 0 : index
    %35 = vector.load %arg1[%c4, %c0_31, %c0_32] : memref<9x128x128xf32, #tpu.memory_space<vmem>>, vector<1x128x128xf32>
    %36 = vector.shape_cast %35 : vector<1x128x128xf32> to vector<128x128xf32>
    %cst_33 = arith.constant dense<0.000000e+00> : vector<1x128xf32>
    %37 = tpu.matmul %34, %36, %cst_33 {dimension_numbers = #tpu.dot_dimension_numbers<[1], [0], [0], [1], [0, 0, 1, 1], [], []>} : vector<1x128xf32>, vector<128x128xf32>, vector<1x128xf32> -> vector<1x128xf32>
    %c4_34 = arith.constant 4 : index
    %c0_35 = arith.constant 0 : index
    %c0_36 = arith.constant 0 : index
    %38 = vector.load %arg2[%c4_34, %c0_35, %c0_36] : memref<9x1x128xf32, #tpu.memory_space<vmem>>, vector<1x1x128xf32>
    %39 = vector.shape_cast %38 : vector<1x1x128xf32> to vector<1x128xf32>
    %40 = arith.addf %37, %39 : vector<1x128xf32>
    %cst_37 = arith.constant 0.000000e+00 : f32
    %41 = vector.broadcast %cst_37 : f32 to vector<1x128xf32>
    %42 = arith.maximumf %40, %41 : vector<1x128xf32>
    %c5 = arith.constant 5 : index
    %c0_38 = arith.constant 0 : index
    %c0_39 = arith.constant 0 : index
    %43 = vector.load %arg1[%c5, %c0_38, %c0_39] : memref<9x128x128xf32, #tpu.memory_space<vmem>>, vector<1x128x128xf32>
    %44 = vector.shape_cast %43 : vector<1x128x128xf32> to vector<128x128xf32>
    %cst_40 = arith.constant dense<0.000000e+00> : vector<1x128xf32>
    %45 = tpu.matmul %42, %44, %cst_40 {dimension_numbers = #tpu.dot_dimension_numbers<[1], [0], [0], [1], [0, 0, 1, 1], [], []>} : vector<1x128xf32>, vector<128x128xf32>, vector<1x128xf32> -> vector<1x128xf32>
    %c5_41 = arith.constant 5 : index
    %c0_42 = arith.constant 0 : index
    %c0_43 = arith.constant 0 : index
    %46 = vector.load %arg2[%c5_41, %c0_42, %c0_43] : memref<9x1x128xf32, #tpu.memory_space<vmem>>, vector<1x1x128xf32>
    %47 = vector.shape_cast %46 : vector<1x1x128xf32> to vector<1x128xf32>
    %48 = arith.addf %45, %47 : vector<1x128xf32>
    %cst_44 = arith.constant 0.000000e+00 : f32
    %49 = vector.broadcast %cst_44 : f32 to vector<1x128xf32>
    %50 = arith.maximumf %48, %49 : vector<1x128xf32>
    %c6 = arith.constant 6 : index
    %c0_45 = arith.constant 0 : index
    %c0_46 = arith.constant 0 : index
    %51 = vector.load %arg1[%c6, %c0_45, %c0_46] : memref<9x128x128xf32, #tpu.memory_space<vmem>>, vector<1x128x128xf32>
    %52 = vector.shape_cast %51 : vector<1x128x128xf32> to vector<128x128xf32>
    %cst_47 = arith.constant dense<0.000000e+00> : vector<1x128xf32>
    %53 = tpu.matmul %50, %52, %cst_47 {dimension_numbers = #tpu.dot_dimension_numbers<[1], [0], [0], [1], [0, 0, 1, 1], [], []>} : vector<1x128xf32>, vector<128x128xf32>, vector<1x128xf32> -> vector<1x128xf32>
    %c6_48 = arith.constant 6 : index
    %c0_49 = arith.constant 0 : index
    %c0_50 = arith.constant 0 : index
    %54 = vector.load %arg2[%c6_48, %c0_49, %c0_50] : memref<9x1x128xf32, #tpu.memory_space<vmem>>, vector<1x1x128xf32>
    %55 = vector.shape_cast %54 : vector<1x1x128xf32> to vector<1x128xf32>
    %56 = arith.addf %53, %55 : vector<1x128xf32>
    %cst_51 = arith.constant 0.000000e+00 : f32
    %57 = vector.broadcast %cst_51 : f32 to vector<1x128xf32>
    %58 = arith.maximumf %56, %57 : vector<1x128xf32>
    %c7 = arith.constant 7 : index
    %c0_52 = arith.constant 0 : index
    %c0_53 = arith.constant 0 : index
    %59 = vector.load %arg1[%c7, %c0_52, %c0_53] : memref<9x128x128xf32, #tpu.memory_space<vmem>>, vector<1x128x128xf32>
    %60 = vector.shape_cast %59 : vector<1x128x128xf32> to vector<128x128xf32>
    %cst_54 = arith.constant dense<0.000000e+00> : vector<1x128xf32>
    %61 = tpu.matmul %58, %60, %cst_54 {dimension_numbers = #tpu.dot_dimension_numbers<[1], [0], [0], [1], [0, 0, 1, 1], [], []>} : vector<1x128xf32>, vector<128x128xf32>, vector<1x128xf32> -> vector<1x128xf32>
    %c7_55 = arith.constant 7 : index
    %c0_56 = arith.constant 0 : index
    %c0_57 = arith.constant 0 : index
    %62 = vector.load %arg2[%c7_55, %c0_56, %c0_57] : memref<9x1x128xf32, #tpu.memory_space<vmem>>, vector<1x1x128xf32>
    %63 = vector.shape_cast %62 : vector<1x1x128xf32> to vector<1x128xf32>
    %64 = arith.addf %61, %63 : vector<1x128xf32>
    %cst_58 = arith.constant 0.000000e+00 : f32
    %65 = vector.broadcast %cst_58 : f32 to vector<1x128xf32>
    %66 = arith.maximumf %64, %65 : vector<1x128xf32>
    %c8 = arith.constant 8 : index
    %c0_59 = arith.constant 0 : index
    %c0_60 = arith.constant 0 : index
    %67 = vector.load %arg1[%c8, %c0_59, %c0_60] : memref<9x128x128xf32, #tpu.memory_space<vmem>>, vector<1x128x128xf32>
    %68 = vector.shape_cast %67 : vector<1x128x128xf32> to vector<128x128xf32>
    %cst_61 = arith.constant dense<0.000000e+00> : vector<1x128xf32>
    %69 = tpu.matmul %66, %68, %cst_61 {dimension_numbers = #tpu.dot_dimension_numbers<[1], [0], [0], [1], [0, 0, 1, 1], [], []>} : vector<1x128xf32>, vector<128x128xf32>, vector<1x128xf32> -> vector<1x128xf32>
    %c8_62 = arith.constant 8 : index
    %c0_63 = arith.constant 0 : index
    %c0_64 = arith.constant 0 : index
    %70 = vector.load %arg2[%c8_62, %c0_63, %c0_64] : memref<9x1x128xf32, #tpu.memory_space<vmem>>, vector<1x1x128xf32>
    %71 = vector.shape_cast %70 : vector<1x1x128xf32> to vector<1x128xf32>
    %72 = arith.addf %69, %71 : vector<1x128xf32>
    %c0_65 = arith.constant 0 : index
    %c0_66 = arith.constant 0 : index
    %73 = vector.load %arg3[%c0_65, %c0_66] : memref<1x128xf32, #tpu.memory_space<vmem>>, vector<1x128xf32>
    tpu.vector_store %arg3[%c0_65, %c0_66], %72 {strides = array<i32>} : memref<1x128xf32, #tpu.memory_space<vmem>>, vector<1x128xf32>,
    return
  }
}

</mosaic_0001>

<bundles_post_ra>
// kernel: tpu_custom_call.1
= control target key start
LH: loop header
LB: loop body
LE: loop exit
PB: predicated region body
PF: predicated region fallthrough
CT: control target
= control target key end

     0   :  { %8 = vsyncpa [#allocation3], 0  ;;  %s1649_s0 = inlined_call_operand.hbm [shape: f32[8,128], index: 0, kind: input, shape index: {}]   ;;  %s1650_s1 = inlined_call_operand.hbm [shape: f32[9,128,128], index: 1, kind: input, shape index: {}]   ;;  %s1651_s2 = inlined_call_operand.hbm [shape: f32[9,1,128], index: 2, kind: input, shape index: {}]   ;;  %s1652_s3 = inlined_call_operand.hbm [shape: f32[1,128], index: 3, kind: output, shape index: {}]  }
   0x1   :  { %9 = vsyncpa [#allocation6], 0 }
   0x2   :  { %10 = vsyncpa [#allocation4], 0  ;;  %s1445_s12 = smov [#allocation5]  }
   0x3   :  { %s26_s13 = sshll.u32 %s1445_s12, 4  ;;  %s27_s13 = int_to_ptr.vmem [resolvable:$true] %s26_s13 }
   0x4   :  { %s1367_s14 = scalar_lea.vmem %s27_s13, 18432  ;;  %p1372_p1 = scmp.lt.s32.totalorder %s27_s13, %s27_s13 }
   0x5   :  { %p1368_p0 = scmp.ne.s32.totalorder %s27_s13, %s1367_s14  ;;  %p1373_p2 = scmp.lt.s32.totalorder %s1367_s14, %s1367_s14 }
   0x7   :  { %p1374_p3 = por %p1373_p2, %p1372_p1 }
   0x9   :  { %p1375_p4 = pnand %p1374_p3, %p1368_p0 }
   0xb   :  { %1378 = shalt.err (!%p1375_p4)
}
   0xc   :  { %s1446_s15 = smov 128   ;;  %s1447_s16 = smov 8  }
   0xd   :  { %32 = dma.hbm_to_vmem [thread:$0]  %s1650_s1, 18432, %s27_s13, [#allocation6], %s1446_s15, %s1446_s15, %s1447_s16  }
   0xe   :  { %s1448_s19 = smov [#allocation2]   ;;  %s1449_s21 = smov [#allocation7]  }
   0xf   :  { %s17_s20 = sshll.u32 %s1448_s19, 4  ;;  %s38_s22 = sshll.u32 %s1449_s21, 4  ;;  %s18_s20 = int_to_ptr.vmem [resolvable:$true] %s17_s20  ;;  %s39_s22 = int_to_ptr.vmem [resolvable:$true] %s38_s22 }
  0x10   :  { %s1387_s23 = scalar_lea.vmem %s18_s20, 128  ;;  %p1392_p6 = scmp.lt.s32.totalorder %s18_s20, %s18_s20 }
  0x11   :  { %p1388_p5 = scmp.ne.s32.totalorder %s18_s20, %s1387_s23  ;;  %p1393_p7 = scmp.lt.s32.totalorder %s1387_s23, %s1387_s23 }
  0x13   :  { %p1394_p8 = por %p1393_p7, %p1392_p6 }
  0x15   :  { %p1395_p9 = pnand %p1394_p8, %p1388_p5 }
  0x17   :  { %1398 = shalt.err (!%p1395_p9)
}
  0x18   :  { %20 = dma.hbm_to_vmem [thread:$0]  %s1649_s0, 128, %s18_s20, [#allocation3]  }
  0x19   :  { %s1407_s26 = scalar_lea.vmem %s39_s22, 144  ;;  %s1411_s1 = scalar_lea.vmem %s39_s22, 160 }
  0x1a   :  { %p1408_p10 = scmp.ne.s32.totalorder %s39_s22, %s1407_s26  ;;  %p1412_p11 = scmp.lt.s32.totalorder %s39_s22, %s39_s22 }
  0x1b   :  { %p1413_p12 = scmp.lt.s32.totalorder %s1411_s1, %s1407_s26 }
  0x1d   :  { %p1414_p13 = por %p1413_p12, %p1412_p11 }
  0x1f   :  { %p1415_p0 = pnand %p1414_p13, %p1408_p10 }
  0x21   :  { %1418 = shalt.err (!%p1415_p0)
}
  0x22   :  { %s1450_s27 = smov 16   ;;  %s1451_s28 = smov 1  }
  0x23   :  { %44 = dma.hbm_to_vmem [thread:$0]  %s1651_s2, 144, %s39_s22, [#allocation6], %s1450_s27, %s1450_s27, %s1451_s28  }
  0x24   :  { %1439 = dma.done.wait [#allocation3], 128  }
  0x25   :  { %1440 = vsyncadd [#allocation3], 4294967168 }
  0x26   :  { %1441 = dma.done.wait [#allocation6], 18576  }
  0x27   :  { %1442 = vsyncadd [#allocation6], 4294948720  ;;  %v1452_v0 = vmov 0.0   ;;  %vm1453_vm0 = vmmov 0   ;;  %v71_v1 = vld [vmem:[#allocation5 + $0x78] sm:$0xff]  ;;  %v70_v2 = vld [vmem:[#allocation5 + $0x70] sm:$0xff] }
  0x28   :  { %1034 = vmatprep.subr.mxu0 %v1452_v0  ;;  %1066 = vmatprep.mubr.msk.f32.mxu0 %vm1453_vm0, %v1452_v0  ;;  %v69_v3 = vld [vmem:[#allocation5 + $0x68] sm:$0xff]  ;;  %v68_v4 = vld [vmem:[#allocation5 + $0x60] sm:$0xff]  ;;  %v160_v5 = vld [vmem:[#allocation5 + $0xf8] sm:$0xff]  ;;  %s1454_s0 = smov [#allocation8]  }
  0x29   :  { %1069 = vmatprep.subr.mxu1 %v1452_v0  ;;  %1101 = vmatprep.mubr.msk.f32.mxu1 %vm1453_vm0, %v1452_v0  ;;  %v67_v6 = vld [vmem:[#allocation5 + $0x58] sm:$0xff]  ;;  %v159_v7 = vld [vmem:[#allocation5 + $0xf0] sm:$0xff]  ;;  %v158_v8 = vld [vmem:[#allocation5 + $0xe8] sm:$0xff]  ;;  %s871_s2 = sshll.u32 %s1454_s0, 4  ;;  %s872_s2 = int_to_ptr.vmem [resolvable:$true] %s871_s2 }
  0x2a   :  { %1035 = vmatpush3.msra.mxu0 %v71_v1  ;;  %1070 = vmatpush3.msra.mxu1 %v160_v5  ;;  %v66_v9 = vld [vmem:[#allocation5 + $0x50] sm:$0xff]  ;;  %v157_v10 = vld [vmem:[#allocation5 + $0xe0] sm:$0xff]  ;;  %v65_v11 = vld [vmem:[#allocation5 + $0x48] sm:$0xff]  ;;  %s1419_s4 = scalar_lea.vmem %s872_s2, 16  ;;  %s1423_s5 = scalar_lea.vmem %s872_s2, 32 }
  0x2b   :  { %1036 = vmatprep.subr.mxu0 %v1452_v0  ;;  %1071 = vmatprep.subr.mxu1 %v1452_v0  ;;  %v156_v12 = vld [vmem:[#allocation5 + $0xd8] sm:$0xff]  ;;  %v64_v13 = vld [vmem:[#allocation5 + $0x40] sm:$0xff]  ;;  %v155_v14 = vld [vmem:[#allocation5 + $0xd0] sm:$0xff]  ;;  %p1420_p1 = scmp.ne.s32.totalorder %s872_s2, %s1419_s4  ;;  %p1424_p2 = scmp.lt.s32.totalorder %s872_s2, %s872_s2 }
  0x2c   :  { %1037 = vmatpush3.msra.mxu0 %v70_v2  ;;  %1072 = vmatpush3.msra.mxu1 %v159_v7  ;;  %v63_v15 = vld [vmem:[#allocation5 + $0x38] sm:$0xff]  ;;  %v154_v16 = vld [vmem:[#allocation5 + $0xc8] sm:$0xff]  ;;  %v62_v17 = vld [vmem:[#allocation5 + $0x30] sm:$0xff]  ;;  %p1425_p3 = scmp.lt.s32.totalorder %s1423_s5, %s1419_s4 }
  0x2d   :  { %1038 = vmatprep.subr.mxu0 %v1452_v0  ;;  %1073 = vmatprep.subr.mxu1 %v1452_v0  ;;  %v153_v18 = vld [vmem:[#allocation5 + $0xc0] sm:$0xff]  ;;  %v61_v19 = vld [vmem:[#allocation5 + $0x28] sm:$0xff]  ;;  %v152_v20 = vld [vmem:[#allocation5 + $0xb8] sm:$0xff] }
  0x2e   :  { %1039 = vmatpush3.msra.mxu0 %v69_v3  ;;  %1074 = vmatpush3.msra.mxu1 %v158_v8  ;;  %v60_v21 = vld [vmem:[#allocation5 + $0x20] sm:$0xff]  ;;  %v151_v22 = vld [vmem:[#allocation5 + $0xb0] sm:$0xff]  ;;  %v59_v23 = vld [vmem:[#allocation5 + $0x18] sm:$0xff]  ;;  %p1426_p4 = por %p1425_p3, %p1424_p2 }
  0x2f   :  { %1040 = vmatprep.subr.mxu0 %v1452_v0  ;;  %1075 = vmatprep.subr.mxu1 %v1452_v0  ;;  %v150_v24 = vld [vmem:[#allocation5 + $0xa8] sm:$0xff]  ;;  %v58_v25 = vld [vmem:[#allocation5 + $0x10] sm:$0xff]  ;;  %v149_v26 = vld [vmem:[#allocation5 + $0xa0] sm:$0xff] }
  0x30   :  { %1041 = vmatpush3.msra.mxu0 %v68_v4  ;;  %1076 = vmatpush3.msra.mxu1 %v157_v10  ;;  %v57_v27 = vld [vmem:[#allocation5 + $0x8] sm:$0xff]  ;;  %v148_v28 = vld [vmem:[#allocation5 + $0x98] sm:$0xff]  ;;  %v56_v29 = vld [vmem:[#allocation5] sm:$0xff]  ;;  %p1427_p5 = pnand %p1426_p4, %p1420_p1 }
  0x31   :  { %1042 = vmatprep.subr.mxu0 %v1452_v0  ;;  %1077 = vmatprep.subr.mxu1 %v1452_v0  ;;  %v54_v30 = vld [vmem:[#allocation2] sm:$0x1]  ;;  %v147_v31 = vld [vmem:[#allocation5 + $0x90] sm:$0xff]  ;;  %v146_v32 = vld [vmem:[#allocation5 + $0x88] sm:$0xff] }
  0x32   :  { %1043 = vmatpush3.msra.mxu0 %v67_v6  ;;  %1078 = vmatpush3.msra.mxu1 %v156_v12  ;;  %v145_v33 = vld [vmem:[#allocation5 + $0x80] sm:$0xff]  ;;  %v250_v34 = vld [vmem:[#allocation5 + $0x178] sm:$0xff]  ;;  %v249_v35 = vld [vmem:[#allocation5 + $0x170] sm:$0xff] }
  0x33   :  { %1044 = vmatprep.subr.mxu0 %v1452_v0  ;;  %1079 = vmatprep.subr.mxu1 %v1452_v0  ;;  %v248_v36 = vld [vmem:[#allocation5 + $0x168] sm:$0xff]  ;;  %v247_v37 = vld [vmem:[#allocation5 + $0x160] sm:$0xff]  ;;  %v246_v38 = vld [vmem:[#allocation5 + $0x158] sm:$0xff] }
  0x34   :  { %1045 = vmatpush3.msra.mxu0 %v66_v9  ;;  %1080 = vmatpush3.msra.mxu1 %v155_v14  ;;  %v245_v39 = vld [vmem:[#allocation5 + $0x150] sm:$0xff]  ;;  %v244_v40 = vld [vmem:[#allocation5 + $0x148] sm:$0xff]  ;;  %v243_v41 = vld [vmem:[#allocation5 + $0x140] sm:$0xff] }
  0x35   :  { %1046 = vmatprep.subr.mxu0 %v1452_v0  ;;  %1081 = vmatprep.subr.mxu1 %v1452_v0  ;;  %v242_v42 = vld [vmem:[#allocation5 + $0x138] sm:$0xff]  ;;  %v241_v43 = vld [vmem:[#allocation5 + $0x130] sm:$0xff]  ;;  %v240_v44 = vld [vmem:[#allocation5 + $0x128] sm:$0xff] }
  0x36   :  { %1047 = vmatpush3.msra.mxu0 %v65_v11  ;;  %1082 = vmatpush3.msra.mxu1 %v154_v16  ;;  %v239_v45 = vld [vmem:[#allocation5 + $0x120] sm:$0xff]  ;;  %v238_v46 = vld [vmem:[#allocation5 + $0x118] sm:$0xff]  ;;  %v237_v52 = vld [vmem:[#allocation5 + $0x110] sm:$0xff] }
  0x37   :  { %1048 = vmatprep.subr.mxu0 %v1452_v0  ;;  %1083 = vmatprep.subr.mxu1 %v1452_v0  ;;  %v72_v47 = vld [vmem:[#allocation7] sm:$0x1]  ;;  %v236_v53 = vld [vmem:[#allocation5 + $0x108] sm:$0xff]  ;;  %v340_v55 = vld [vmem:[#allocation5 + $0x1f8] sm:$0xff] }
  0x38   :  { %1049 = vmatpush3.msra.mxu0 %v64_v13  ;;  %1084 = vmatpush3.msra.mxu1 %v153_v18  ;;  %v235_v54 = vld [vmem:[#allocation5 + $0x100] sm:$0xff]  ;;  %v339_v56 = vld [vmem:[#allocation5 + $0x1f0] sm:$0xff]  ;;  %v338_v57 = vld [vmem:[#allocation5 + $0x1e8] sm:$0xff] }
  0x39   :  { %1050 = vmatprep.subr.mxu0 %v1452_v0  ;;  %1085 = vmatprep.subr.mxu1 %v1452_v0  ;;  %v337_v58 = vld [vmem:[#allocation5 + $0x1e0] sm:$0xff]  ;;  %v336_v59 = vld [vmem:[#allocation5 + $0x1d8] sm:$0xff]  ;;  %v335_v60 = vld [vmem:[#allocation5 + $0x1d0] sm:$0xff] }
  0x3a   :  { %1051 = vmatpush3.msra.mxu0 %v63_v15  ;;  %1086 = vmatpush3.msra.mxu1 %v152_v20  ;;  %v334_v61 = vld [vmem:[#allocation5 + $0x1c8] sm:$0xff]  ;;  %v333_v62 = vld [vmem:[#allocation5 + $0x1c0] sm:$0xff]  ;;  %v332_v63 = vld [vmem:[#allocation5 + $0x1b8] sm:$0xff] }
  0x3b   :  { %1052 = vmatprep.subr.mxu0 %v1452_v0  ;;  %1087 = vmatprep.subr.mxu1 %v1452_v0  ;;  %v331_v1 = vld [vmem:[#allocation5 + $0x1b0] sm:$0xff]  ;;  %v330_v2 = vld [vmem:[#allocation5 + $0x1a8] sm:$0xff]  ;;  %v329_v3 = vld [vmem:[#allocation5 + $0x1a0] sm:$0xff] }
  0x3c   :  { %1053 = vmatpush3.msra.mxu0 %v62_v17  ;;  %1088 = vmatpush3.msra.mxu1 %v151_v22  ;;  %v328_v4 = vld [vmem:[#allocation5 + $0x198] sm:$0xff]  ;;  %v162_v5 = vld [vmem:[#allocation7 + $0x1] sm:$0x1]  ;;  %v327_v10 = vld [vmem:[#allocation5 + $0x190] sm:$0xff] }
  0x3d   :  { %1054 = vmatprep.subr.mxu0 %v1452_v0  ;;  %1089 = vmatprep.subr.mxu1 %v1452_v0  ;;  %v326_v11 = vld [vmem:[#allocation5 + $0x188] sm:$0xff]  ;;  %v325_v12 = vld [vmem:[#allocation5 + $0x180] sm:$0xff]  ;;  %v431_v13 = vld [vmem:[#allocation5 + $0x278] sm:$0xff] }
  0x3e   :  { %1055 = vmatpush3.msra.mxu0 %v61_v19  ;;  %1090 = vmatpush3.msra.mxu1 %v150_v24  ;;  %v430_v14 = vld [vmem:[#allocation5 + $0x270] sm:$0xff]  ;;  %v429_v15 = vld [vmem:[#allocation5 + $0x268] sm:$0xff]  ;;  %v428_v16 = vld [vmem:[#allocation5 + $0x260] sm:$0xff] }
  0x3f   :  { %1056 = vmatprep.subr.mxu0 %v1452_v0  ;;  %1091 = vmatprep.subr.mxu1 %v1452_v0  ;;  %v427_v17 = vld [vmem:[#allocation5 + $0x258] sm:$0xff]  ;;  %v426_v18 = vld [vmem:[#allocation5 + $0x250] sm:$0xff]  ;;  %v425_v19 = vld [vmem:[#allocation5 + $0x248] sm:$0xff] }
  0x40   :  { %1057 = vmatpush3.msra.mxu0 %v60_v21  ;;  %1092 = vmatpush3.msra.mxu1 %v149_v26  ;;  %v424_v20 = vld [vmem:[#allocation5 + $0x240] sm:$0xff]  ;;  %v423_v21 = vld [vmem:[#allocation5 + $0x238] sm:$0xff]  ;;  %v422_v22 = vld [vmem:[#allocation5 + $0x230] sm:$0xff] }
  0x41   :  { %1058 = vmatprep.subr.mxu0 %v1452_v0  ;;  %1093 = vmatprep.subr.mxu1 %v1452_v0  ;;  %v420_v24 = vld [vmem:[#allocation5 + $0x220] sm:$0xff] }
  0x42   :  { %1059 = vmatpush3.msra.mxu0 %v59_v23  ;;  %1094 = vmatpush3.msra.mxu1 %v148_v28  ;;  %v421_v23 = vld [vmem:[#allocation5 + $0x228] sm:$0xff] }
  0x43   :  { %1060 = vmatprep.subr.mxu0 %v1452_v0  ;;  %1095 = vmatprep.subr.mxu1 %v1452_v0 }
  0x44   :  { %1061 = vmatpush3.msra.mxu0 %v58_v25  ;;  %1096 = vmatpush3.msra.mxu1 %v147_v31  ;;  %v252_v25 = vld [vmem:[#allocation7 + $0x2] sm:$0x1]  ;;  %v418_v31 = vld [vmem:[#allocation5 + $0x210] sm:$0xff] }
  0x45   :  { %1062 = vmatprep.subr.mxu0 %v1452_v0  ;;  %1097 = vmatprep.subr.mxu1 %v1452_v0 }
  0x46   :  { %1063 = vmatpush3.msra.mxu0 %v57_v27  ;;  %1098 = vmatpush3.msra.mxu1 %v146_v32  ;;  %v417_v32 = vld [vmem:[#allocation5 + $0x208] sm:$0xff] }
  0x47   :  { %1064 = vmatprep.subr.mxu0 %v1452_v0  ;;  %1099 = vmatprep.subr.mxu1 %v1452_v0 }
  0x48   :  { %1065 = vmatpush3.msra.mxu0 %v56_v29  ;;  %1100 = vmatpush3.msra.mxu1 %v145_v33  ;;  %v416_v33 = vld [vmem:[#allocation5 + $0x200] sm:$0xff] }
  0x49   :  { %1067 = vmatmul.mubr.f32.vlgmr.msra.gmra.mxu0 %v54_v30  ;;  %1104 = vmatprep.subr.mxu0 %v1452_v0  ;;  %v419_v30 = vld [vmem:[#allocation5 + $0x218] sm:$0xff] }
  0x4a   :  { %1136 = vmatprep.mubr.msk.f32.mxu0 %vm1453_vm0, %v1452_v0  ;;  %1139 = vmatprep.subr.mxu1 %v1452_v0 }
  0x4b   :  { %1105 = vmatpush3.msra.mxu0 %v250_v34  ;;  %v521_v34 = vld [vmem:[#allocation5 + $0x2f8] sm:$0xff] }
  0x4c   :  { %1106 = vmatprep.subr.mxu0 %v1452_v0 }
  0x4d   :  { %1107 = vmatpush3.msra.mxu0 %v249_v35  ;;  %v520_v35 = vld [vmem:[#allocation5 + $0x2f0] sm:$0xff] }
  0x4e   :  { %1108 = vmatprep.subr.mxu0 %v1452_v0 }
  0x4f   :  { %1109 = vmatpush3.msra.mxu0 %v248_v36  ;;  %v519_v36 = vld [vmem:[#allocation5 + $0x2e8] sm:$0xff] }
  0x50   :  { %1110 = vmatprep.subr.mxu0 %v1452_v0 }
  0x51   :  { %1111 = vmatpush3.msra.mxu0 %v247_v37  ;;  %v518_v37 = vld [vmem:[#allocation5 + $0x2e0] sm:$0xff] }
  0x52   :  { %1112 = vmatprep.subr.mxu0 %v1452_v0 }
  0x53   :  { %1113 = vmatpush3.msra.mxu0 %v246_v38  ;;  %v517_v38 = vld [vmem:[#allocation5 + $0x2d8] sm:$0xff] }
  0x54   :  { %1114 = vmatprep.subr.mxu0 %v1452_v0 }
  0x55   :  { %1115 = vmatpush3.msra.mxu0 %v245_v39  ;;  %v516_v39 = vld [vmem:[#allocation5 + $0x2d0] sm:$0xff] }
  0x56   :  { %1116 = vmatprep.subr.mxu0 %v1452_v0 }
  0x57   :  { %1117 = vmatpush3.msra.mxu0 %v244_v40  ;;  %v515_v40 = vld [vmem:[#allocation5 + $0x2c8] sm:$0xff] }
  0x58   :  { %1118 = vmatprep.subr.mxu0 %v1452_v0 }
  0x59   :  { %1119 = vmatpush3.msra.mxu0 %v243_v41  ;;  %v514_v41 = vld [vmem:[#allocation5 + $0x2c0] sm:$0xff] }
  0x5a   :  { %1120 = vmatprep.subr.mxu0 %v1452_v0 }
  0x5b   :  { %1121 = vmatpush3.msra.mxu0 %v242_v42  ;;  %v513_v42 = vld [vmem:[#allocation5 + $0x2b8] sm:$0xff] }
  0x5c   :  { %1122 = vmatprep.subr.mxu0 %v1452_v0 }
  0x5d   :  { %1123 = vmatpush3.msra.mxu0 %v241_v43  ;;  %v512_v43 = vld [vmem:[#allocation5 + $0x2b0] sm:$0xff] }
  0x5e   :  { %1124 = vmatprep.subr.mxu0 %v1452_v0 }
  0x5f   :  { %1125 = vmatpush3.msra.mxu0 %v240_v44  ;;  %v511_v44 = vld [vmem:[#allocation5 + $0x2a8] sm:$0xff] }
  0x60   :  { %1126 = vmatprep.subr.mxu0 %v1452_v0 }
  0x61   :  { %1127 = vmatpush3.msra.mxu0 %v239_v45  ;;  %v510_v45 = vld [vmem:[#allocation5 + $0x2a0] sm:$0xff] }
  0x62   :  { %1128 = vmatprep.subr.mxu0 %v1452_v0 }
  0x63   :  { %1129 = vmatpush3.msra.mxu0 %v238_v46  ;;  %v509_v46 = vld [vmem:[#allocation5 + $0x298] sm:$0xff] }
  0x64   :  { %1130 = vmatprep.subr.mxu0 %v1452_v0 }
  0x65   :  { %1131 = vmatpush3.msra.mxu0 %v237_v52 }
  0x66   :  { %1132 = vmatprep.subr.mxu0 %v1452_v0 }
  0x67   :  { %1133 = vmatpush3.msra.mxu0 %v236_v53 }
  0x68   :  { %1134 = vmatprep.subr.mxu0 %v1452_v0 }
  0x69   :  { %1135 = vmatpush3.msra.mxu0 %v235_v54  ;;  %v508_v54 = vld [vmem:[#allocation5 + $0x290] sm:$0xff] }
  0x6a   :  { %1174 = vmatprep.subr.mxu0 %v1452_v0 }
 0x109   :  { %v139_v48 = vpop.f32.mrf.mxu0 }
 0x10a   :  { %v140_v49 = vadd.f32 %v139_v48, %v72_v47  ;;  %v342_v47 = vld [vmem:[#allocation7 + $0x3] sm:$0x1] }
 0x10b   :  { %v1068_v50 = vpop.f32.mrf.mxu0 }
 0x10c   :  { %v143_v51 = vmax.f32 %v140_v49, 0.0  ;;  %v55_v50 = vld [vmem:[#allocation2 + $0x1] sm:$0x1] }
 0x10e   :  { %1102 = vmatmul.mubr.f32.vlgmr.msra.gmra.mxu1 %v143_v51 }
 0x10f   :  { %1171 = vmatprep.mubr.msk.f32.mxu1 %vm1453_vm0, %v1452_v0  ;;  %1140 = vmatpush3.msra.mxu1 %v340_v55  ;;  %v507_v55 = vld [vmem:[#allocation5 + $0x288] sm:$0xff] }
 0x110   :  { %1141 = vmatprep.subr.mxu1 %v1452_v0 }
 0x111   :  { %1142 = vmatpush3.msra.mxu1 %v339_v56  ;;  %v506_v56 = vld [vmem:[#allocation5 + $0x280] sm:$0xff] }
 0x112   :  { %1143 = vmatprep.subr.mxu1 %v1452_v0 }
 0x113   :  { %1144 = vmatpush3.msra.mxu1 %v338_v57  ;;  %v611_v57 = vld [vmem:[#allocation5 + $0x378] sm:$0xff] }
 0x114   :  { %1145 = vmatprep.subr.mxu1 %v1452_v0 }
 0x115   :  { %1146 = vmatpush3.msra.mxu1 %v337_v58  ;;  %v610_v58 = vld [vmem:[#allocation5 + $0x370] sm:$0xff] }
 0x116   :  { %1147 = vmatprep.subr.mxu1 %v1452_v0 }
 0x117   :  { %1148 = vmatpush3.msra.mxu1 %v336_v59  ;;  %v609_v59 = vld [vmem:[#allocation5 + $0x368] sm:$0xff] }
 0x118   :  { %1149 = vmatprep.subr.mxu1 %v1452_v0 }
 0x119   :  { %1150 = vmatpush3.msra.mxu1 %v335_v60  ;;  %v608_v60 = vld [vmem:[#allocation5 + $0x360] sm:$0xff] }
 0x11a   :  { %1151 = vmatprep.subr.mxu1 %v1452_v0 }
 0x11b   :  { %1152 = vmatpush3.msra.mxu1 %v334_v61  ;;  %v607_v61 = vld [vmem:[#allocation5 + $0x358] sm:$0xff] }
 0x11c   :  { %1153 = vmatprep.subr.mxu1 %v1452_v0 }
 0x11d   :  { %1154 = vmatpush3.msra.mxu1 %v333_v62  ;;  %v606_v62 = vld [vmem:[#allocation5 + $0x350] sm:$0xff] }
 0x11e   :  { %1155 = vmatprep.subr.mxu1 %v1452_v0 }
 0x11f   :  { %1156 = vmatpush3.msra.mxu1 %v332_v63  ;;  %v605_v63 = vld [vmem:[#allocation5 + $0x348] sm:$0xff] }
 0x120   :  { %1157 = vmatprep.subr.mxu1 %v1452_v0 }
 0x121   :  { %1158 = vmatpush3.msra.mxu1 %v331_v1  ;;  %v604_v1 = vld [vmem:[#allocation5 + $0x340] sm:$0xff] }
 0x122   :  { %1159 = vmatprep.subr.mxu1 %v1452_v0 }
 0x123   :  { %1160 = vmatpush3.msra.mxu1 %v330_v2  ;;  %v603_v2 = vld [vmem:[#allocation5 + $0x338] sm:$0xff] }
 0x124   :  { %1161 = vmatprep.subr.mxu1 %v1452_v0 }
 0x125   :  { %1162 = vmatpush3.msra.mxu1 %v329_v3  ;;  %v602_v3 = vld [vmem:[#allocation5 + $0x330] sm:$0xff] }
 0x126   :  { %1163 = vmatprep.subr.mxu1 %v1452_v0 }
 0x127   :  { %1164 = vmatpush3.msra.mxu1 %v328_v4  ;;  %v601_v4 = vld [vmem:[#allocation5 + $0x328] sm:$0xff] }
 0x128   :  { %1165 = vmatprep.subr.mxu1 %v1452_v0 }
 0x129   :  { %1166 = vmatpush3.msra.mxu1 %v327_v10 }
 0x12a   :  { %1167 = vmatprep.subr.mxu1 %v1452_v0 }
 0x12b   :  { %1168 = vmatpush3.msra.mxu1 %v326_v11 }
 0x12c   :  { %1169 = vmatprep.subr.mxu1 %v1452_v0 }
 0x12d   :  { %1170 = vmatpush3.msra.mxu1 %v325_v12  ;;  %v598_v12 = vld [vmem:[#allocation5 + $0x310] sm:$0xff] }
 0x12e   :  { %1209 = vmatprep.subr.mxu1 %v1452_v0 }
 0x1ce   :  { %v229_v6 = vpop.f32.mrf.mxu1 }
 0x1cf   :  { %v230_v7 = vadd.f32 %v229_v6, %v162_v5  ;;  %v600_v5 = vld [vmem:[#allocation5 + $0x320] sm:$0xff]  ;;  %v599_v6 = vld [vmem:[#allocation5 + $0x318] sm:$0xff] }
 0x1d0   :  { %v1103_v8 = vpop.f32.mrf.mxu1 }
 0x1d1   :  { %v233_v9 = vmax.f32 %v230_v7, 0.0  ;;  %v433_v7 = vld [vmem:[#allocation7 + $0x4] sm:$0x1] }
 0x1d3   :  { %1137 = vmatmul.mubr.f32.vlgmr.msra.gmra.mxu0 %v233_v9 }
 0x1d4   :  { %1206 = vmatprep.mubr.msk.f32.mxu0 %vm1453_vm0, %v1452_v0  ;;  %1175 = vmatpush3.msra.mxu0 %v431_v13  ;;  %v597_v13 = vld [vmem:[#allocation5 + $0x308] sm:$0xff] }
 0x1d5   :  { %1176 = vmatprep.subr.mxu0 %v1452_v0 }
 0x1d6   :  { %1177 = vmatpush3.msra.mxu0 %v430_v14  ;;  %v596_v14 = vld [vmem:[#allocation5 + $0x300] sm:$0xff] }
 0x1d7   :  { %1178 = vmatprep.subr.mxu0 %v1452_v0 }
 0x1d8   :  { %1179 = vmatpush3.msra.mxu0 %v429_v15  ;;  %v701_v15 = vld [vmem:[#allocation5 + $0x3f8] sm:$0xff] }
 0x1d9   :  { %1180 = vmatprep.subr.mxu0 %v1452_v0 }
 0x1da   :  { %1181 = vmatpush3.msra.mxu0 %v428_v16  ;;  %v700_v16 = vld [vmem:[#allocation5 + $0x3f0] sm:$0xff] }
 0x1db   :  { %1182 = vmatprep.subr.mxu0 %v1452_v0 }
 0x1dc   :  { %1183 = vmatpush3.msra.mxu0 %v427_v17  ;;  %v699_v17 = vld [vmem:[#allocation5 + $0x3e8] sm:$0xff] }
 0x1dd   :  { %1184 = vmatprep.subr.mxu0 %v1452_v0 }
 0x1de   :  { %1185 = vmatpush3.msra.mxu0 %v426_v18  ;;  %v698_v18 = vld [vmem:[#allocation5 + $0x3e0] sm:$0xff] }
 0x1df   :  { %1186 = vmatprep.subr.mxu0 %v1452_v0 }
 0x1e0   :  { %1187 = vmatpush3.msra.mxu0 %v425_v19  ;;  %v697_v19 = vld [vmem:[#allocation5 + $0x3d8] sm:$0xff] }
 0x1e1   :  { %1188 = vmatprep.subr.mxu0 %v1452_v0 }
 0x1e2   :  { %1189 = vmatpush3.msra.mxu0 %v424_v20  ;;  %v696_v20 = vld [vmem:[#allocation5 + $0x3d0] sm:$0xff] }
 0x1e3   :  { %1190 = vmatprep.subr.mxu0 %v1452_v0 }
 0x1e4   :  { %1191 = vmatpush3.msra.mxu0 %v423_v21  ;;  %v695_v21 = vld [vmem:[#allocation5 + $0x3c8] sm:$0xff] }
 0x1e5   :  { %1192 = vmatprep.subr.mxu0 %v1452_v0 }
 0x1e6   :  { %1193 = vmatpush3.msra.mxu0 %v422_v22  ;;  %v694_v22 = vld [vmem:[#allocation5 + $0x3c0] sm:$0xff] }
 0x1e7   :  { %1194 = vmatprep.subr.mxu0 %v1452_v0 }
 0x1e8   :  { %1195 = vmatpush3.msra.mxu0 %v421_v23  ;;  %v693_v23 = vld [vmem:[#allocation5 + $0x3b8] sm:$0xff] }
 0x1e9   :  { %1196 = vmatprep.subr.mxu0 %v1452_v0 }
 0x1ea   :  { %1197 = vmatpush3.msra.mxu0 %v420_v24  ;;  %v692_v24 = vld [vmem:[#allocation5 + $0x3b0] sm:$0xff] }
 0x1eb   :  { %1198 = vmatprep.subr.mxu0 %v1452_v0 }
 0x1ec   :  { %1199 = vmatpush3.msra.mxu0 %v419_v30 }
 0x1ed   :  { %1200 = vmatprep.subr.mxu0 %v1452_v0 }
 0x1ee   :  { %1201 = vmatpush3.msra.mxu0 %v418_v31 }
 0x1ef   :  { %1202 = vmatprep.subr.mxu0 %v1452_v0 }
 0x1f0   :  { %1203 = vmatpush3.msra.mxu0 %v417_v32 }
 0x1f1   :  { %1204 = vmatprep.subr.mxu0 %v1452_v0 }
 0x1f2   :  { %1205 = vmatpush3.msra.mxu0 %v416_v33  ;;  %v688_v33 = vld [vmem:[#allocation5 + $0x390] sm:$0xff] }
 0x1f3   :  { %1244 = vmatprep.subr.mxu0 %v1452_v0 }
 0x293   :  { %v319_v26 = vpop.f32.mrf.mxu0 }
 0x294   :  { %v320_v27 = vadd.f32 %v319_v26, %v252_v25  ;;  %v691_v25 = vld [vmem:[#allocation5 + $0x3a8] sm:$0xff]  ;;  %v690_v26 = vld [vmem:[#allocation5 + $0x3a0] sm:$0xff] }
 0x295   :  { %v1138_v28 = vpop.f32.mrf.mxu0 }
 0x296   :  { %v323_v29 = vmax.f32 %v320_v27, 0.0  ;;  %v689_v27 = vld [vmem:[#allocation5 + $0x398] sm:$0xff]  ;;  %v523_v28 = vld [vmem:[#allocation7 + $0x5] sm:$0x1] }
 0x298   :  { %1172 = vmatmul.mubr.f32.vlgmr.msra.gmra.mxu1 %v323_v29 }
 0x299   :  { %1241 = vmatprep.mubr.msk.f32.mxu1 %vm1453_vm0, %v1452_v0  ;;  %1210 = vmatpush3.msra.mxu1 %v521_v34  ;;  %v687_v34 = vld [vmem:[#allocation5 + $0x388] sm:$0xff] }
 0x29a   :  { %1211 = vmatprep.subr.mxu1 %v1452_v0 }
 0x29b   :  { %1212 = vmatpush3.msra.mxu1 %v520_v35  ;;  %v686_v35 = vld [vmem:[#allocation5 + $0x380] sm:$0xff] }
 0x29c   :  { %1213 = vmatprep.subr.mxu1 %v1452_v0 }
 0x29d   :  { %1214 = vmatpush3.msra.mxu1 %v519_v36  ;;  %v791_v36 = vld [vmem:[#allocation5 + $0x478] sm:$0xff] }
 0x29e   :  { %1215 = vmatprep.subr.mxu1 %v1452_v0 }
 0x29f   :  { %1216 = vmatpush3.msra.mxu1 %v518_v37  ;;  %v790_v37 = vld [vmem:[#allocation5 + $0x470] sm:$0xff] }
 0x2a0   :  { %1217 = vmatprep.subr.mxu1 %v1452_v0 }
 0x2a1   :  { %1218 = vmatpush3.msra.mxu1 %v517_v38  ;;  %v789_v38 = vld [vmem:[#allocation5 + $0x468] sm:$0xff] }
 0x2a2   :  { %1219 = vmatprep.subr.mxu1 %v1452_v0 }
 0x2a3   :  { %1220 = vmatpush3.msra.mxu1 %v516_v39  ;;  %v788_v39 = vld [vmem:[#allocation5 + $0x460] sm:$0xff] }
 0x2a4   :  { %1221 = vmatprep.subr.mxu1 %v1452_v0 }
 0x2a5   :  { %1222 = vmatpush3.msra.mxu1 %v515_v40  ;;  %v787_v40 = vld [vmem:[#allocation5 + $0x458] sm:$0xff] }
 0x2a6   :  { %1223 = vmatprep.subr.mxu1 %v1452_v0 }
 0x2a7   :  { %1224 = vmatpush3.msra.mxu1 %v514_v41  ;;  %v786_v41 = vld [vmem:[#allocation5 + $0x450] sm:$0xff] }
 0x2a8   :  { %1225 = vmatprep.subr.mxu1 %v1452_v0 }
 0x2a9   :  { %1226 = vmatpush3.msra.mxu1 %v513_v42  ;;  %v785_v42 = vld [vmem:[#allocation5 + $0x448] sm:$0xff] }
 0x2aa   :  { %1227 = vmatprep.subr.mxu1 %v1452_v0 }
 0x2ab   :  { %1228 = vmatpush3.msra.mxu1 %v512_v43  ;;  %v784_v43 = vld [vmem:[#allocation5 + $0x440] sm:$0xff] }
 0x2ac   :  { %1229 = vmatprep.subr.mxu1 %v1452_v0 }
 0x2ad   :  { %1230 = vmatpush3.msra.mxu1 %v511_v44  ;;  %v783_v44 = vld [vmem:[#allocation5 + $0x438] sm:$0xff] }
 0x2ae   :  { %1231 = vmatprep.subr.mxu1 %v1452_v0 }
 0x2af   :  { %1232 = vmatpush3.msra.mxu1 %v510_v45  ;;  %v782_v45 = vld [vmem:[#allocation5 + $0x430] sm:$0xff] }
 0x2b0   :  { %1233 = vmatprep.subr.mxu1 %v1452_v0 }
 0x2b1   :  { %1234 = vmatpush3.msra.mxu1 %v509_v46  ;;  %v781_v46 = vld [vmem:[#allocation5 + $0x428] sm:$0xff] }
 0x2b2   :  { %1235 = vmatprep.subr.mxu1 %v1452_v0 }
 0x2b3   :  { %1236 = vmatpush3.msra.mxu1 %v508_v54  ;;  %v778_v54 = vld [vmem:[#allocation5 + $0x410] sm:$0xff] }
 0x2b4   :  { %1237 = vmatprep.subr.mxu1 %v1452_v0 }
 0x2b5   :  { %1238 = vmatpush3.msra.mxu1 %v507_v55  ;;  %v777_v55 = vld [vmem:[#allocation5 + $0x408] sm:$0xff] }
 0x2b6   :  { %1239 = vmatprep.subr.mxu1 %v1452_v0 }
 0x2b7   :  { %1240 = vmatpush3.msra.mxu1 %v506_v56  ;;  %v776_v56 = vld [vmem:[#allocation5 + $0x400] sm:$0xff] }
 0x2b8   :  { %1279 = vmatprep.subr.mxu1 %v1452_v0 }
 0x358   :  { %v409_v48 = vpop.f32.mrf.mxu1 }
 0x359   :  { %v410_v49 = vadd.f32 %v409_v48, %v342_v47  ;;  %v780_v47 = vld [vmem:[#allocation5 + $0x420] sm:$0xff]  ;;  %v779_v48 = vld [vmem:[#allocation5 + $0x418] sm:$0xff] }
 0x35a   :  { %v1173_v51 = vpop.f32.mrf.mxu1 }
 0x35b   :  { %v413_v52 = vmax.f32 %v410_v49, 0.0  ;;  %v613_v49 = vld [vmem:[#allocation7 + $0x6] sm:$0x1] }
 0x35d   :  { %v414_v53 = vadd.f32 %v413_v52, %v55_v50 }
 0x35f   :  { %1207 = vmatmul.mubr.f32.vlgmr.msra.gmra.mxu0 %v414_v53 }
 0x360   :  { %1276 = vmatprep.mubr.msk.f32.mxu0 %vm1453_vm0, %v1452_v0  ;;  %1245 = vmatpush3.msra.mxu0 %v611_v57  ;;  %v703_v57 = vld [vmem:[#allocation7 + $0x7] sm:$0x1] }
 0x361   :  { %1246 = vmatprep.subr.mxu0 %v1452_v0 }
 0x362   :  { %1247 = vmatpush3.msra.mxu0 %v610_v58 }
 0x363   :  { %1248 = vmatprep.subr.mxu0 %v1452_v0 }
 0x364   :  { %1249 = vmatpush3.msra.mxu0 %v609_v59 }
 0x365   :  { %1250 = vmatprep.subr.mxu0 %v1452_v0 }
 0x366   :  { %1251 = vmatpush3.msra.mxu0 %v608_v60 }
 0x367   :  { %1252 = vmatprep.subr.mxu0 %v1452_v0 }
 0x368   :  { %1253 = vmatpush3.msra.mxu0 %v607_v61 }
 0x369   :  { %1254 = vmatprep.subr.mxu0 %v1452_v0 }
 0x36a   :  { %1255 = vmatpush3.msra.mxu0 %v606_v62  ;;  %v793_v62 = vld [vmem:[#allocation7 + $0x8] sm:$0x1] }
 0x36b   :  { %1256 = vmatprep.subr.mxu0 %v1452_v0 }
 0x36c   :  { %1257 = vmatpush3.msra.mxu0 %v605_v63 }
 0x36d   :  { %1258 = vmatprep.subr.mxu0 %v1452_v0 }
 0x36e   :  { %1259 = vmatpush3.msra.mxu0 %v604_v1 }
 0x36f   :  { %1260 = vmatprep.subr.mxu0 %v1452_v0 }
 0x370   :  { %1261 = vmatpush3.msra.mxu0 %v603_v2 }
 0x371   :  { %1262 = vmatprep.subr.mxu0 %v1452_v0 }
 0x372   :  { %1263 = vmatpush3.msra.mxu0 %v602_v3 }
 0x373   :  { %1264 = vmatprep.subr.mxu0 %v1452_v0 }
 0x374   :  { %1265 = vmatpush3.msra.mxu0 %v601_v4 }
 0x375   :  { %1266 = vmatprep.subr.mxu0 %v1452_v0 }
 0x376   :  { %1267 = vmatpush3.msra.mxu0 %v600_v5 }
 0x377   :  { %1268 = vmatprep.subr.mxu0 %v1452_v0 }
 0x378   :  { %1269 = vmatpush3.msra.mxu0 %v599_v6 }
 0x379   :  { %1270 = vmatprep.subr.mxu0 %v1452_v0 }
 0x37a   :  { %1271 = vmatpush3.msra.mxu0 %v598_v12 }
 0x37b   :  { %1272 = vmatprep.subr.mxu0 %v1452_v0 }
 0x37c   :  { %1273 = vmatpush3.msra.mxu0 %v597_v13 }
 0x37d   :  { %1274 = vmatprep.subr.mxu0 %v1452_v0 }
 0x37e   :  { %1275 = vmatpush3.msra.mxu0 %v596_v14 }
 0x37f   :  { %1314 = vmatprep.subr.mxu0 %v1452_v0 }
 0x41f   :  { %v500_v8 = vpop.f32.mrf.mxu0 }
 0x420   :  { %v501_v9 = vadd.f32 %v500_v8, %v433_v7 }
 0x421   :  { %v1208_v10 = vpop.f32.mrf.mxu0 }
 0x422   :  { %v504_v11 = vmax.f32 %v501_v9, 0.0 }
 0x424   :  { %1242 = vmatmul.mubr.f32.vlgmr.msra.gmra.mxu1 %v504_v11 }
 0x425   :  { %1311 = vmatprep.mubr.msk.f32.mxu1 %vm1453_vm0, %v1452_v0  ;;  %1280 = vmatpush3.msra.mxu1 %v701_v15 }
 0x426   :  { %1281 = vmatprep.subr.mxu1 %v1452_v0 }
 0x427   :  { %1282 = vmatpush3.msra.mxu1 %v700_v16 }
 0x428   :  { %1283 = vmatprep.subr.mxu1 %v1452_v0 }
 0x429   :  { %1284 = vmatpush3.msra.mxu1 %v699_v17 }
 0x42a   :  { %1285 = vmatprep.subr.mxu1 %v1452_v0 }
 0x42b   :  { %1286 = vmatpush3.msra.mxu1 %v698_v18 }
 0x42c   :  { %1287 = vmatprep.subr.mxu1 %v1452_v0 }
 0x42d   :  { %1288 = vmatpush3.msra.mxu1 %v697_v19 }
 0x42e   :  { %1289 = vmatprep.subr.mxu1 %v1452_v0 }
 0x42f   :  { %1290 = vmatpush3.msra.mxu1 %v696_v20 }
 0x430   :  { %1291 = vmatprep.subr.mxu1 %v1452_v0 }
 0x431   :  { %1292 = vmatpush3.msra.mxu1 %v695_v21 }
 0x432   :  { %1293 = vmatprep.subr.mxu1 %v1452_v0 }
 0x433   :  { %1294 = vmatpush3.msra.mxu1 %v694_v22 }
 0x434   :  { %1295 = vmatprep.subr.mxu1 %v1452_v0 }
 0x435   :  { %1296 = vmatpush3.msra.mxu1 %v693_v23 }
 0x436   :  { %1297 = vmatprep.subr.mxu1 %v1452_v0 }
 0x437   :  { %1298 = vmatpush3.msra.mxu1 %v692_v24 }
 0x438   :  { %1299 = vmatprep.subr.mxu1 %v1452_v0 }
 0x439   :  { %1300 = vmatpush3.msra.mxu1 %v691_v25 }
 0x43a   :  { %1301 = vmatprep.subr.mxu1 %v1452_v0 }
 0x43b   :  { %1302 = vmatpush3.msra.mxu1 %v690_v26 }
 0x43c   :  { %1303 = vmatprep.subr.mxu1 %v1452_v0 }
 0x43d   :  { %1304 = vmatpush3.msra.mxu1 %v689_v27 }
 0x43e   :  { %1305 = vmatprep.subr.mxu1 %v1452_v0 }
 0x43f   :  { %1306 = vmatpush3.msra.mxu1 %v688_v33 }
 0x440   :  { %1307 = vmatprep.subr.mxu1 %v1452_v0 }
 0x441   :  { %1308 = vmatpush3.msra.mxu1 %v687_v34 }
 0x442   :  { %1309 = vmatprep.subr.mxu1 %v1452_v0 }
 0x443   :  { %1310 = vmatpush3.msra.mxu1 %v686_v35 }
 0x4e4   :  { %v590_v29 = vpop.f32.mrf.mxu1 }
 0x4e5   :  { %v591_v30 = vadd.f32 %v590_v29, %v523_v28 }
 0x4e6   :  { %v1243_v31 = vpop.f32.mrf.mxu1 }
 0x4e7   :  { %v594_v32 = vmax.f32 %v591_v30, 0.0 }
 0x4e9   :  { %1277 = vmatmul.mubr.f32.vlgmr.msra.gmra.mxu0 %v594_v32 }
 0x4ea   :  { %1346 = vmatprep.mubr.msk.f32.mxu0 %vm1453_vm0, %v1452_v0  ;;  %1315 = vmatpush3.msra.mxu0 %v791_v36 }
 0x4eb   :  { %1316 = vmatprep.subr.mxu0 %v1452_v0 }
 0x4ec   :  { %1317 = vmatpush3.msra.mxu0 %v790_v37 }
 0x4ed   :  { %1318 = vmatprep.subr.mxu0 %v1452_v0 }
 0x4ee   :  { %1319 = vmatpush3.msra.mxu0 %v789_v38 }
 0x4ef   :  { %1320 = vmatprep.subr.mxu0 %v1452_v0 }
 0x4f0   :  { %1321 = vmatpush3.msra.mxu0 %v788_v39 }
 0x4f1   :  { %1322 = vmatprep.subr.mxu0 %v1452_v0 }
 0x4f2   :  { %1323 = vmatpush3.msra.mxu0 %v787_v40 }
 0x4f3   :  { %1324 = vmatprep.subr.mxu0 %v1452_v0 }
 0x4f4   :  { %1325 = vmatpush3.msra.mxu0 %v786_v41 }
 0x4f5   :  { %1326 = vmatprep.subr.mxu0 %v1452_v0 }
 0x4f6   :  { %1327 = vmatpush3.msra.mxu0 %v785_v42 }
 0x4f7   :  { %1328 = vmatprep.subr.mxu0 %v1452_v0 }
 0x4f8   :  { %1329 = vmatpush3.msra.mxu0 %v784_v43 }
 0x4f9   :  { %1330 = vmatprep.subr.mxu0 %v1452_v0 }
 0x4fa   :  { %1331 = vmatpush3.msra.mxu0 %v783_v44 }
 0x4fb   :  { %1332 = vmatprep.subr.mxu0 %v1452_v0 }
 0x4fc   :  { %1333 = vmatpush3.msra.mxu0 %v782_v45 }
 0x4fd   :  { %1334 = vmatprep.subr.mxu0 %v1452_v0 }
 0x4fe   :  { %1335 = vmatpush3.msra.mxu0 %v781_v46 }
 0x4ff   :  { %1336 = vmatprep.subr.mxu0 %v1452_v0 }
 0x500   :  { %1337 = vmatpush3.msra.mxu0 %v780_v47 }
 0x501   :  { %1338 = vmatprep.subr.mxu0 %v1452_v0 }
 0x502   :  { %1339 = vmatpush3.msra.mxu0 %v779_v48 }
 0x503   :  { %1340 = vmatprep.subr.mxu0 %v1452_v0 }
 0x504   :  { %1341 = vmatpush3.msra.mxu0 %v778_v54 }
 0x505   :  { %1342 = vmatprep.subr.mxu0 %v1452_v0 }
 0x506   :  { %1343 = vmatpush3.msra.mxu0 %v777_v55 }
 0x507   :  { %1344 = vmatprep.subr.mxu0 %v1452_v0 }
 0x508   :  { %1345 = vmatpush3.msra.mxu0 %v776_v56 }
 0x5a9   :  { %v680_v50 = vpop.f32.mrf.mxu0 }
 0x5aa   :  { %v681_v51 = vadd.f32 %v680_v50, %v613_v49 }
 0x5ab   :  { %v1278_v52 = vpop.f32.mrf.mxu0 }
 0x5ac   :  { %v684_v53 = vmax.f32 %v681_v51, 0.0 }
 0x5ae   :  { %1312 = vmatmul.mubr.f32.vlgmr.msra.gmra.mxu1 %v684_v53 }
 0x66e   :  { %v770_v58 = vpop.f32.mrf.mxu1 }
 0x66f   :  { %v771_v59 = vadd.f32 %v770_v58, %v703_v57 }
 0x670   :  { %v1313_v60 = vpop.f32.mrf.mxu1 }
 0x671   :  { %v774_v61 = vmax.f32 %v771_v59, 0.0 }
 0x673   :  { %1347 = vmatmul.mubr.f32.vlgmr.msra.gmra.mxu0 %v774_v61 }
 0x733   :  { %v860_v63 = vpop.f32.mrf.mxu0 }
 0x734   :  { %v861_v1 = vadd.f32 %v860_v63, %v793_v62 }
 0x735   :  { %v1348_v2 = vpop.f32.mrf.mxu0 }
 0x736   :  { %864 = vst [vmem:[#allocation8] sm:$0x1] %v861_v1 }
 0x737   :  { %1430 = shalt.err (!%p1427_p5)
}
 0x738   :  { %874 = dma.vmem_to_hbm [thread:$0]  %s872_s2, 16, %s1652_s3, [#allocation4]  }
 0x739   :  { %1443 = dma.done.wait [#allocation4], 16  }
 0x73a   :  { %1444 = vsyncadd [#allocation4], 4294967280 }
 0x73b   :  { %878 = vsyncpa [#allocation3], 1 }
 0x73c   :  { %879 = vsyncpa [#allocation6], 1 }
 0x73d   :  { %880 = vsyncpa [#allocation4], 1 }

</bundles_post_ra>
